<compile_context>
chip_gen: v7x
topology: tpu7x:2x2x1
jax: 0.10.0
libtpu: 0.0.40
codegen_flags: <defaults>
</compile_context>

<pallas_src>
import functools

import jax
import jax.numpy as jnp
from jax import lax
from jax.experimental import pallas as pl
from jax.experimental.pallas import tpu as pltpu

NUM_LAYERS = 8
EPS = 1e-8
LEAK = 0.2


def _mapping_kernel(x_ref, w_ref, b_ref, o_ref, h_ref):
    """One (batch-block, layer) grid step.

    x_ref: (TB, D)    f32  input latents (same block across layer steps)
    w_ref: (1, D, D)  bf16 pre-scaled weight for this layer, (in, out) layout
    b_ref: (1, 1, D)  f32  pre-scaled bias for this layer
    o_ref: (TB, D)         output block (written only on the last layer)
    h_ref: (TB, D)    f32  VMEM scratch carrying the activation across layers
    """
    layer = pl.program_id(1)

    # Layer 0: PixelNorm over the feature dim (dim=1 in the PyTorch module).
    @pl.when(layer == 0)
    def _init():
        x = x_ref[...].astype(jnp.float32)
        mean_sq = jnp.mean(x * x, axis=1, keepdims=True)
        h_ref[...] = x * lax.rsqrt(mean_sq + EPS)

    # FC layer: matmul on the MXU (bf16 inputs, f32 accumulation) + bias
    # + leaky_relu(0.2).
    h = h_ref[...]
    w = w_ref[0]                       # (D, D) bf16
    b = b_ref[0]                       # (1, D) f32
    y = jnp.dot(h.astype(jnp.bfloat16), w,
                preferred_element_type=jnp.float32) + b
    h = jnp.where(y >= 0.0, y, LEAK * y)
    h_ref[...] = h

    @pl.when(layer == pl.num_programs(1) - 1)
    def _finalize():
        o_ref[...] = h.astype(o_ref.dtype)


def prepare_params(weights, biases, *, lrmul=0.01, gain=2.0 ** 0.5,
                   use_wscale=True):
    """One-time parameter prep (hoisted out of the per-call path):
    fold the per-layer lrmul / wscale scalars into the weights, transpose to
    (in, out) so each layer is a plain x @ W, stack, and cast weights to bf16
    to halve the dominant HBM->VMEM weight traffic."""
    w_stack, b_stack = [], []
    for w, b in zip(weights, biases):
        in_ch = w.shape[1]
        he_std = gain * (in_ch ** -0.5)
        w_lrmul = he_std * lrmul if use_wscale else lrmul
        b_lrmul = lrmul
        w_stack.append((w * w_lrmul).T.astype(jnp.bfloat16))   # (in, out)
        b_stack.append((b * b_lrmul).astype(jnp.float32))
    w_all = jnp.stack(w_stack, axis=0)                          # (L, D, D) bf16
    b_all = jnp.stack(b_stack, axis=0)[:, None, :]              # (L, 1, D) f32
    return w_all, b_all


@functools.partial(jax.jit, static_argnames=("block_b",))
def mapping_network(x, w_all, b_all, *, block_b=128):
    """x: (B, D) f32. w_all: (L, D, D) bf16 (in, out). b_all: (L, 1, D) f32."""
    B, D = x.shape
    L = w_all.shape[0]

    # Batch tile: multiple of 8 sublanes, at most block_b rows.
    if B >= block_b:
        tb = block_b
    else:
        tb = ((B + 7) // 8) * 8
    pad_b = (-B) % tb
    if pad_b:
        x = jnp.pad(x, ((0, pad_b), (0, 0)))
    Bp = B + pad_b

    # Explicit VMEM budget: double-buffered x / weight / bias / output tiles
    # plus the activation scratch, with 2x headroom (min 4 MiB).
    vmem_bytes = (2 * tb * D * 4        # x tile (double-buffered)
                  + 2 * D * D * 2       # weight tile (bf16, double-buffered)
                  + 2 * D * 4           # bias tile
                  + 2 * tb * D * 4      # output tile
                  + tb * D * 4)         # activation scratch
    vmem_limit = max(2 * vmem_bytes, 4 << 20)

    out = pl.pallas_call(
        _mapping_kernel,
        out_shape=jax.ShapeDtypeStruct((Bp, D), x.dtype),
        grid_spec=pltpu.PrefetchScalarGridSpec(
            num_scalar_prefetch=0,
            grid=(Bp // tb, L),
            in_specs=[
                pl.BlockSpec((tb, D), lambda bi, l: (bi, 0)),
                pl.BlockSpec((1, D, D), lambda bi, l: (l, 0, 0)),
                pl.BlockSpec((1, 1, D), lambda bi, l: (l, 0, 0)),
            ],
            out_specs=pl.BlockSpec((tb, D), lambda bi, l: (bi, 0)),
            scratch_shapes=[pltpu.VMEM((tb, D), jnp.float32)],
        ),
        compiler_params=pltpu.CompilerParams(
            dimension_semantics=("parallel", "arbitrary"),
            vmem_limit_bytes=int(vmem_limit)),
    )(x, w_all, b_all)

    return out[:B]


def reference_forward(x, weights, biases, *, lrmul=0.01, gain=2.0 ** 0.5,
                      use_wscale=True):
    """Pure-JAX f32 reference mirroring the PyTorch module."""
    tmp = x * x
    x = x * lax.rsqrt(jnp.mean(tmp, axis=1, keepdims=True) + EPS)
    for w, b in zip(weights, biases):
        in_ch = w.shape[1]
        he_std = gain * (in_ch ** -0.5)
        w_lrmul = he_std * lrmul if use_wscale else lrmul
        y = x @ (w * w_lrmul).T + b * lrmul
        x = jnp.where(y >= 0.0, y, LEAK * y)
    return x


if __name__ == "__main__":
    # Small shapes consistent with the module (latent_z_length == w_length).
    B = 8          # batch
    D = 128        # latent / w dimensionality (lane-dense)
    lrmul = 0.01
    use_wscale = True

    key = jax.random.PRNGKey(0)
    keys = jax.random.split(key, NUM_LAYERS + 1)

    x = jax.random.normal(keys[0], (B, D), dtype=jnp.float32)

    # Deterministic parameter init, matching FC.__init__:
    #   weight = randn(out, in) * init_std  (init_std = 1/lrmul when use_wscale)
    #   bias   = zeros(out)
    init_std = 1.0 / lrmul if use_wscale else (2.0 ** 0.5) * (D ** -0.5) / lrmul
    weights = [jax.random.normal(keys[i + 1], (D, D), dtype=jnp.float32) * init_std
               for i in range(NUM_LAYERS)]
    biases = [jnp.zeros((D,), dtype=jnp.float32) for _ in range(NUM_LAYERS)]

    # One-time parameter preparation (scale + transpose + stack + bf16 cast),
    # hoisted out of the per-call path per the perf review.
    w_all, b_all = prepare_params(weights, biases, lrmul=lrmul,
                                  use_wscale=use_wscale)
    w_all, b_all = jax.block_until_ready((w_all, b_all))

    out = mapping_network(x, w_all, b_all)
    out = jax.block_until_ready(out)

    ref = reference_forward(x, weights, biases, lrmul=lrmul,
                            use_wscale=use_wscale)
    assert out.shape == (B, D)
    # bf16 weights/activations inside the matmuls -> loosened tolerance.
    assert jnp.allclose(out, ref, atol=5e-2, rtol=5e-2), "mismatch vs reference"

    print("KERNEL_OK")
</pallas_src>

<mosaic_0001>
module attributes {stable_mosaic.version = 11 : i64} {
  func.func @_mapping_kernel(%arg0: i32, %arg1: i32, %arg2: memref<8x128xf32, #tpu.memory_space<vmem>>, %arg3: memref<1x128x128xbf16, #tpu.memory_space<vmem>>, %arg4: memref<1x1x128xf32, #tpu.memory_space<vmem>>, %arg5: memref<8x128xf32, #tpu.memory_space<vmem>>, %arg6: memref<8x128xf32, #tpu.memory_space<vmem>>) attributes {dimension_semantics = [#tpu.dimension_semantics<parallel>, #tpu.dimension_semantics<arbitrary>], iteration_bounds = array<i64: 1, 8>, scalar_prefetch = 0 : i64, scratch_operands = 1 : i64, tpu.core_type = #tpu.core_type<tc>, window_params = [{transform_indices = @transform_0, window_bounds = array<i64: 8, 128>}, {transform_indices = @transform_1, window_bounds = array<i64: 1, 128, 128>}, {transform_indices = @transform_2, window_bounds = array<i64: 1, 1, 128>}, {transform_indices = @transform_3, window_bounds = array<i64: 8, 128>}]} {
    %c0_i32 = arith.constant 0 : i32
    %0 = arith.cmpi eq, %arg1, %c0_i32 : i32
    %1 = arith.extui %0 : i1 to i32
    %c0_i32_0 = arith.constant 0 : i32
    %2 = arith.cmpi ne, %1, %c0_i32_0 : i32
    scf.if %2 {
      %c0_13 = arith.constant 0 : index
      %c0_14 = arith.constant 0 : index
      %21 = vector.load %arg2[%c0_13, %c0_14] : memref<8x128xf32, #tpu.memory_space<vmem>>, vector<8x128xf32>
      %22 = arith.mulf %21, %21 : vector<8x128xf32>
      %cst_15 = arith.constant dense<0.000000e+00> : vector<8xf32>
      %23 = vector.multi_reduction <add>, %22, %cst_15 [1] : vector<8x128xf32> to vector<8xf32>
      %24 = vector.shape_cast %23 : vector<8xf32> to vector<8x1xf32>
      %cst_16 = arith.constant 1.280000e+02 : f32
      %25 = vector.broadcast %cst_16 : f32 to vector<8x1xf32>
      %26 = arith.divf %24, %25 : vector<8x1xf32>
      %cst_17 = arith.constant 9.99999993E-9 : f32
      %27 = vector.broadcast %cst_17 : f32 to vector<8x1xf32>
      %28 = arith.addf %26, %27 : vector<8x1xf32>
      %29 = math.rsqrt %28 : vector<8x1xf32>
      %30 = vector.broadcast %29 : vector<8x1xf32> to vector<8x128xf32>
      %31 = arith.mulf %21, %30 : vector<8x128xf32>
      %c0_18 = arith.constant 0 : index
      %c0_19 = arith.constant 0 : index
      %32 = vector.load %arg6[%c0_18, %c0_19] : memref<8x128xf32, #tpu.memory_space<vmem>>, vector<8x128xf32>
      tpu.vector_store %arg6[%c0_18, %c0_19], %31 {strides = array<i32>} : memref<8x128xf32, #tpu.memory_space<vmem>>, vector<8x128xf32>,
    } else {
    }
    %c0 = arith.constant 0 : index
    %c0_1 = arith.constant 0 : index
    %3 = vector.load %arg6[%c0, %c0_1] : memref<8x128xf32, #tpu.memory_space<vmem>>, vector<8x128xf32>
    %c0_2 = arith.constant 0 : index
    %c0_3 = arith.constant 0 : index
    %c0_4 = arith.constant 0 : index
    %4 = vector.load %arg3[%c0_2, %c0_3, %c0_4] : memref<1x128x128xbf16, #tpu.memory_space<vmem>>, vector<1x128x128xbf16>
    %5 = vector.shape_cast %4 : vector<1x128x128xbf16> to vector<128x128xbf16>
    %c0_5 = arith.constant 0 : index
    %c0_6 = arith.constant 0 : index
    %c0_7 = arith.constant 0 : index
    %6 = vector.load %arg4[%c0_5, %c0_6, %c0_7] : memref<1x1x128xf32, #tpu.memory_space<vmem>>, vector<1x1x128xf32>
    %7 = vector.shape_cast %6 : vector<1x1x128xf32> to vector<1x128xf32>
    %8 = arith.truncf %3 : vector<8x128xf32> to vector<8x128xbf16>
    %cst = arith.constant dense<0.000000e+00> : vector<8x128xf32>
    %9 = tpu.matmul %8, %5, %cst {dimension_numbers = #tpu.dot_dimension_numbers<[1], [0], [0], [1], [0, 0, 1, 1], [], []>} : vector<8x128xbf16>, vector<128x128xbf16>, vector<8x128xf32> -> vector<8x128xf32>
    %10 = vector.broadcast %7 : vector<1x128xf32> to vector<8x128xf32>
    %11 = arith.addf %9, %10 : vector<8x128xf32>
    %cst_8 = arith.constant 0.000000e+00 : f32
    %12 = vector.broadcast %cst_8 : f32 to vector<8x128xf32>
    %13 = arith.cmpf oge, %11, %12 : vector<8x128xf32>
    %cst_9 = arith.constant 2.000000e-01 : f32
    %14 = vector.broadcast %cst_9 : f32 to vector<8x128xf32>
    %15 = arith.mulf %14, %11 : vector<8x128xf32>
    %16 = arith.select %13, %11, %15 : vector<8x128xi1>, vector<8x128xf32>
    %c0_10 = arith.constant 0 : index
    %c0_11 = arith.constant 0 : index
    %17 = vector.load %arg6[%c0_10, %c0_11] : memref<8x128xf32, #tpu.memory_space<vmem>>, vector<8x128xf32>
    tpu.vector_store %arg6[%c0_10, %c0_11], %16 {strides = array<i32>} : memref<8x128xf32, #tpu.memory_space<vmem>>, vector<8x128xf32>,
    %c7_i32 = arith.constant 7 : i32
    %18 = arith.cmpi eq, %arg1, %c7_i32 : i32
    %19 = arith.extui %18 : i1 to i32
    %c0_i32_12 = arith.constant 0 : i32
    %20 = arith.cmpi ne, %19, %c0_i32_12 : i32
    scf.if %20 {
      %c0_13 = arith.constant 0 : index
      %c0_14 = arith.constant 0 : index
      %21 = vector.load %arg5[%c0_13, %c0_14] : memref<8x128xf32, #tpu.memory_space<vmem>>, vector<8x128xf32>
      tpu.vector_store %arg5[%c0_13, %c0_14], %16 {strides = array<i32>} : memref<8x128xf32, #tpu.memory_space<vmem>>, vector<8x128xf32>,
    } else {
    }
    return
  }
  func.func @transform_0(%arg0: i32, %arg1: i32) -> (i32, i32) {
    %c0_i32 = arith.constant 0 : i32
    %c0_i32_0 = arith.constant 0 : i32
    return %arg0, %c0_i32 : i32, i32
  }
  func.func @transform_1(%arg0: i32, %arg1: i32) -> (i32, i32, i32) {
    %c0_i32 = arith.constant 0 : i32
    %c0_i32_0 = arith.constant 0 : i32
    %c0_i32_1 = arith.constant 0 : i32
    return %arg1, %c0_i32, %c0_i32_0 : i32, i32, i32
  }
  func.func @transform_2(%arg0: i32, %arg1: i32) -> (i32, i32, i32) {
    %c0_i32 = arith.constant 0 : i32
    %c0_i32_0 = arith.constant 0 : i32
    %c0_i32_1 = arith.constant 0 : i32
    return %arg1, %c0_i32, %c0_i32_0 : i32, i32, i32
  }
  func.func @transform_3(%arg0: i32, %arg1: i32) -> (i32, i32) {
    %c0_i32 = arith.constant 0 : i32
    %c0_i32_0 = arith.constant 0 : i32
    return %arg0, %c0_i32 : i32, i32
  }
}

</mosaic_0001>

<bundles_post_ra>
// kernel: mapping_network.1
= control target key start
LH: loop header
LB: loop body
LE: loop exit
PB: predicated region body
PF: predicated region fallthrough
CT: control target
= control target key end

     0   :  { %8 = vsyncpa [#allocation4], 0  ;;  %s1064_s0 = inlined_call_operand.hbm [shape: f32[8,128], index: 0, kind: input, shape index: {}]   ;;  %s1065_s1 = inlined_call_operand.hbm [shape: bf16[8,128,128], index: 1, kind: input, shape index: {}]   ;;  %s1066_s2 = inlined_call_operand.hbm [shape: f32[8,1,128], index: 2, kind: input, shape index: {}]   ;;  %s1067_s3 = inlined_call_operand.hbm [shape: f32[8,128], index: 3, kind: output, shape index: {}]  }
   0x1   :  { %9 = vsyncpa [#allocation7], 0 }
   0x2   :  { %11 = vsyncpa [#allocation7 + $0x1], 0 }
   0x3   :  { %12 = vsyncpa [#allocation5], 0  ;;  %s833_s12 = smov 0   ;;  %s835_s13 = smov 0  }
   0x4   :  { %s837_s14 = smov 0   ;;  %s839_s15 = smov 0  }
   0x5   :  { %s841_s16 = smov 0   ;;  %s843_s17 = smov 0  }
   0x6 LB: > { %s27_s18 = sadd.s32 1, %s799_s16  ;;  %s63_s19 = sadd.s32 1, %s791_s14  ;;  %s803_s17 = sphi %s843_s17, %s18_s17   ;;  %s799_s16 = sphi %s841_s16, %s1089_s16   ;;  %s795_s15 = sphi %s839_s15, %s1088_s15   ;;  %s791_s14 = sphi %s837_s14, %s1087_s14   ;;  %s787_s13 = sphi %s835_s13, %s1086_s13   ;;  %s783_s12 = sphi %s833_s12, %s1085_s12  }
   0x7   : > { %p28_p0 = scmp.ge.s32.totalorder %s27_s18, 8  ;;  %p70_p1 = scmp.ne.s32.totalorder %s791_s14, %s787_s13 }
   0x8   : > { %p71_p2 = scmp.eq.s32.totalorder %s803_s17, 0  ;;  %p563_p4 = scmp.lt.s32.totalorder %s803_s17, 8 }
   0x9   : > { %s1091_s18 = smov (%p28_p0, %s27_s18), 0  ;;  %s165_s21 = sand.u32 1, %s803_s17  }
   0xa   : > { %p72_p3 = por %p71_p2, %p70_p1  ;;  %s60_s20 = ssub.s32 %s799_s16, %s1091_s18 }
   0xb   : > { %p61_p5 = scmp.eq.s32.totalorder %s60_s20, 0  ;;  %s167_s22 = sand.u32 1, %s791_s14  }
   0xc   : > { %s509_s23 = sshll.u32 %s799_s16, 10  ;;  %s487_s25 = sshll.u32 %s167_s22, 6 }
   0xd   : > { %s877_s24 = scalar_select %p61_p5, %s791_s14, %s63_s19  }
   0xe   : > { %s884_s28 = scalar_lea.hbm %s1065_s1, %s509_s23  ;;  %p886_p6 = pnand %p563_p4, %p72_p3 }
   0xf   : > { %s169_s30 = scalar_lea.vmem [#allocation6], %s487_s25  ;;  %s892_s5 = scalar_lea.sflag [#allocation7], %s165_s21 }
  0x10   : > { %s1074_s29 = scalar_select %p886_p6, 1, 0 }
  0x11   : > { %s176_s4 = sshll.u32 %s169_s30, 4  ;;  %s631_s6 = scalar_lea.hbm %s884_s28, 1024  ;;  %s890_s4 = int_to_ptr.vmem [resolvable:$true] %s176_s4 }
  0x12   : > { %p632_p7 = scmp.ne.s32.totalorder %s884_s28, %s631_s6  ;;  %p1069_p8 = pneg %p886_p6 }
  0x13   : > { %s636_s9 = scalar_lea.hbm %s1065_s1, 8192  ;;  %p637_p11 = scmp.lt.u32.totalorder %s884_s28, %s1065_s1 }
  0x14   : > { %p634_p9 = pnand %p1069_p8, %p632_p7  ;;  %p638_p12 = scmp.lt.u32.totalorder %s636_s9, %s631_s6 }
  0x15   : > { %p640_p0 = scmp.lt.u32.totalorder %s631_s6, %s884_s28 }
  0x16   : > { %p635_p10 = pneg %p634_p9  ;;  %p639_p13 = por %p638_p12, %p637_p11 }
  0x18   : > { %p641_p1 = por %p640_p0, %p639_p13 }
  0x1a   : > { %p642_p2 = pnand %p641_p1, %p635_p10 }
  0x1c   : > { %645 = shalt.err (!%p642_p2)
}
  0x1d   : > { %s646_s19 = scalar_lea.vmem %s890_s4, 1024  ;;  %s805_s20 = smov [#allocation6]  }
  0x1e   : > { %p647_p3 = scmp.ne.s32.totalorder %s890_s4, %s646_s19  ;;  %s651_s21 = sshll.u32 %s805_s20, 4  ;;  %s652_s21 = int_to_ptr.vmem [resolvable:$false] %s651_s21 }
  0x1f   : > { %s653_s23 = scalar_lea.vmem %s652_s21, 2048  ;;  %p654_p7 = scmp.lt.s32.totalorder %s890_s4, %s652_s21 }
  0x20   : > { %p649_p4 = pnand %p647_p3, %p1069_p8  ;;  %p655_p9 = scmp.lt.s32.totalorder %s653_s23, %s646_s19 }
  0x22   : > { %p650_p5 = pneg %p649_p4  ;;  %p656_p11 = por %p655_p9, %p654_p7 }
  0x24   : > { %p657_p12 = pnand %p656_p11, %p650_p5 }
  0x26   : > { %660 = shalt.err (!%p657_p12)
}
  0x27   : > { %s806_s25 = smov 64   ;;  %s807_s26 = smov 4  }
  0x28   : > { %558 = dma.hbm_to_vmem [thread:$0]  (!%p886_p6), %s884_s28, 1024, %s890_s4, %s892_s5, %s806_s25, %s806_s25, %s807_s26  }
  0x29   : > { %s921_s27 = sadd.s32 4294967295, %s803_s17   ;;  %p76_p10 = scmp.ne.s32.totalorder %s787_s13, %s783_s12 }
  0x2a   : > { %p1068_p13 = scmp.eq.s32.totalorder %s921_s27, 0  ;;  %p484_p0 = scmp.ge.s32.totalorder %s803_s17, 1 }
  0x2b   : > { %p139_p1 = scmp.lt.s32.totalorder %s803_s17, 9  ;;  %s808_s28 = smov [#allocation3]  }
  0x2c   : > { %p930_p2 = por %p1068_p13, %p76_p10  ;;  %s154_s4 = sshll.u32 %s808_s28, 4  ;;  %s155_s4 = int_to_ptr.vmem [resolvable:$true] %s154_s4 }
  0x2d   : > { %p934_p3 = pnand %p484_p0, %p139_p1  ;;  %s490_s7 = sshll.u32 %s799_s16, 4 }
  0x2e   : > { %s1075_s30 = scalar_select %p930_p2, 1, 0 }
  0x2f   : > { %s1076_s6 = scalar_select %p934_p3, 1, 0 }
  0x30   : > { %p551_p4 = pneg %p934_p3  ;;  %s189_s12 = scalar_lea.vmem [#allocation8], %s167_s22 }
  0x31   : > { %s196_s8 = sshll.u32 %s189_s12, 4  ;;  %s952_s19 = scalar_lea.hbm %s1066_s2, %s490_s7  ;;  %s954_s8 = int_to_ptr.vmem [resolvable:$true] %s196_s8 }
  0x32   : > { %p945_p5 = pnand %p551_p4, %p1068_p13  ;;  %s661_s23 = scalar_lea.hbm %s1064_s0, 128 }
  0x33   : > { %p662_p7 = scmp.ne.s32.totalorder %s1064_s0, %s661_s23  ;;  %p668_p10 = scmp.lt.u32.totalorder %s661_s23, %s1064_s0 }
  0x34   : > { %p663_p9 = pneg %p945_p5 }
  0x36   : > { %p664_p11 = pnand %p663_p9, %p662_p7 }
  0x38   : > { %p665_p12 = pneg %p664_p11 }
  0x3a   : > { %p670_p0 = pnand %p668_p10, %p665_p12 }
  0x3c   : > { %673 = shalt.err (!%p670_p0)
}
  0x3d   : > { %s674_s7 = scalar_lea.vmem %s155_s4, 128  ;;  %p682_p8 = scmp.lt.s32.totalorder %s155_s4, %s155_s4 }
  0x3e   : > { %p675_p1 = scmp.ne.s32.totalorder %s155_s4, %s674_s7  ;;  %p683_p2 = scmp.lt.s32.totalorder %s674_s7, %s674_s7 }
  0x40   : > { %p677_p4 = pnand %p675_p1, %p663_p9  ;;  %p684_p3 = por %p683_p2, %p682_p8 }
  0x42   : > { %p678_p13 = pneg %p677_p4 }
  0x44   : > { %p685_p6 = pnand %p684_p3, %p678_p13 }
  0x46   : > { %688 = shalt.err (!%p685_p6)
}
  0x47   : > { %554 = dma.hbm_to_vmem [thread:$0]  (!%p945_p5), %s1064_s0, 128, %s155_s4, [#allocation4]  }
  0x48   : > { %s689_s11 = scalar_lea.hbm %s952_s19, 16  ;;  %p1078_p9 = scmp.ne.s32.totalorder %s1074_s29, 0 }
  0x49   : > { %p690_p7 = scmp.ne.s32.totalorder %s952_s19, %s689_s11  ;;  %s694_s23 = scalar_lea.hbm %s1066_s2, 128 }
  0x4a   : > { %p1079_p11 = pneg %p1078_p9  ;;  %p695_p6 = scmp.lt.u32.totalorder %s952_s19, %s1066_s2 }
  0x4b   : > { %p696_p8 = scmp.lt.u32.totalorder %s694_s23, %s689_s11  ;;  %p698_p2 = scmp.lt.u32.totalorder %s689_s11, %s952_s19 }
  0x4c   : > { %p692_p12 = pnand %p690_p7, %p1079_p11 }
  0x4d   : > { %p697_p13 = por %p696_p8, %p695_p6 }
  0x4e   : > { %p693_p10 = pneg %p692_p12 }
  0x4f   : > { %p699_p3 = por %p698_p2, %p697_p13 }
  0x51   : > { %p700_p0 = pnand %p699_p3, %p693_p10 }
  0x53   : > { %703 = shalt.err (!%p700_p0)
}
  0x54   : > { %s704_s4 = scalar_lea.vmem %s954_s8, 16  ;;  %p1080_p1 = pmov %p1079_p11 }
  0x55   : > { %p705_p5 = scmp.ne.s32.totalorder %s954_s8, %s704_s4  ;;  %s809_s25 = smov [#allocation8]  }
  0x56   : > { %s709_s26 = sshll.u32 %s809_s25, 4  ;;  %s710_s26 = int_to_ptr.vmem [resolvable:$false] %s709_s26 }
  0x57   : > { %p707_p4 = pnand %p705_p5, %p1080_p1  ;;  %s711_s28 = scalar_lea.vmem %s710_s26, 32 }
  0x58   : > { %p712_p11 = scmp.lt.s32.totalorder %s954_s8, %s710_s26  ;;  %p713_p12 = scmp.lt.s32.totalorder %s711_s28, %s704_s4 }
  0x59   : > { %p708_p7 = pneg %p707_p4 }
  0x5a   : > { %p714_p6 = por %p713_p12, %p712_p11 }
  0x5c   : > { %p715_p8 = pnand %p714_p6, %p708_p7 }
  0x5e   : > { %718 = shalt.err (!%p715_p8)
}
  0x5f   : > { %561 = dma.hbm_to_vmem [thread:$0]  (!%p1078_p9), %s952_s19, 16, %s954_s8, %s892_s5  }
  0x60   : > { %p1081_p10 = scmp.ne.s32.totalorder %s1076_s6, 0 }
  0x61   : > { %p1082_p13 = scmp.eq.s32.totalorder (!%p1081_p10), %s921_s27, 0 }
  0x62   : > { %205 = sbr.rel (%p1081_p10) target bundleno = 551 (0x227), region = 32 }
  0x69   : > { %770 = dma.done.wait (%p1082_p13), [#allocation4], 128   ;;  %p1083_p2 = pmov %p1082_p13 }
  0x6a   : > { %s211_s7 = sand.u32 1, %s921_s27   ;;  %s213_s12 = sand.u32 1, %s787_s13  }
  0x6b   : > { %772 = vsyncadd (%p1083_p2), [#allocation4], 4294967168  ;;  %s493_s10 = sshll.u32 %s213_s12, 6  ;;  %s212_s29 = scalar_lea.sflag [#allocation7], %s211_s7 }
  0x6c   : > { %s1004_s11 = scalar_lea.vmem [#allocation6], %s493_s10  ;;  %p1084_p3 = scmp.ne.s32.totalorder %s1075_s30, 0 }
  0x6e   : > { %774 = dma.done.wait (%p1084_p3), %s212_s29, 1040  }
  0x6f   : > { %776 = vsyncadd (%p1084_p3), %s212_s29, 4294966256  ;;  %s1010_s5 = scalar_lea.vmem [#allocation8], %s213_s12  ;;  %p494_p9 = scmp.ne.s32.totalorder %s795_s15, 0 }
  0x70   : > { %v250_v0 = vld [vmem:[#allocation3] sm:$0xff] (!%p494_p9) }
  0x71   : > { %249 = sbr.rel (%p494_p9) target bundleno = 275 (0x113), region = 48  ;;  %v251_v1 = vmul.f32 (!%p494_p9), %v250_v0, %v250_v0 }
  0x73   : > { %252 = vadd.xlane.f32.xlu0 (!%p494_p9), %v251_v1 }
 0x100   : > { %v253_v2 = vpop.xlane.xlu0 %252 }
 0x101   : > { %v255_v3 = vmul.f32 0.0078125, %v253_v2 }
 0x103   : > { %v256_v4 = vadd.f32 1e-08, %v255_v3 }
 0x105   : > { %621 = vrsqrt.f32 %v256_v4 }
 0x10f   : > { %v622_v5 = vpop.eup %621 }
 0x110   : > { %v258_v6 = vmul.f32 %v622_v5, %v250_v0 }
 0x112   : > { %259 = vst [vmem:[#allocation2] sm:$0xff] %v258_v6 }
 0x113 PF: > { %v623_v7 = vld [vmem:[%s1004_s11] sm:$0xff]   ;;  %v810_v8 = vmov 0.0   ;;  %v624_v9 = vld [vmem:[%s1004_s11 + $0x8] sm:$0xff]   ;;  %vm811_vm0 = vmmov 0   ;;  %v625_v10 = vld [vmem:[%s1004_s11 + $0x10] sm:$0xff]   ;;  %p504_p0 = scmp.ne.s32.totalorder %s795_s15, 7 }
 0x114   : > { %519 = vmatprep.subr.bf16.mxu0 %v810_v8  ;;  %535 = vmatprep.mubr.msk.bf16.mxu0 %vm811_vm0, %v810_v8  ;;  %v626_v11 = vld [vmem:[%s1004_s11 + $0x18] sm:$0xff]   ;;  %v627_v12 = vld [vmem:[%s1004_s11 + $0x20] sm:$0xff]   ;;  %v628_v13 = vld [vmem:[%s1004_s11 + $0x28] sm:$0xff]  }
 0x115   : > { %520 = vmatpush3.bf16.msra.mxu0 %v623_v7  ;;  %v629_v14 = vld [vmem:[%s1004_s11 + $0x30] sm:$0xff]   ;;  %v630_v15 = vld [vmem:[%s1004_s11 + $0x38] sm:$0xff]  }
 0x116   : > { %521 = vmatprep.subr.bf16.mxu0 %v810_v8  ;;  %v495_v18 = vld [vmem:[%s1010_s5] ss:$0 sm:$0xff] }
 0x119   : > { %522 = vmatpush3.bf16.msra.mxu0 %v624_v9  ;;  %v260_v16 = vld [vmem:[#allocation2] sm:$0xff] }
 0x11a   : > { %523 = vmatprep.subr.bf16.mxu0 %v810_v8  ;;  %v278_v17 = vpack.c.bf16 %v260_v16, %v260_v16 }
 0x11d   : > { %524 = vmatpush3.bf16.msra.mxu0 %v625_v10 }
 0x11e   : > { %525 = vmatprep.subr.bf16.mxu0 %v810_v8 }
 0x121   : > { %526 = vmatpush3.bf16.msra.mxu0 %v626_v11 }
 0x122   : > { %527 = vmatprep.subr.bf16.mxu0 %v810_v8 }
 0x125   : > { %528 = vmatpush3.bf16.msra.mxu0 %v627_v12 }
 0x126   : > { %529 = vmatprep.subr.bf16.mxu0 %v810_v8 }
 0x129   : > { %530 = vmatpush3.bf16.msra.mxu0 %v628_v13 }
 0x12a   : > { %531 = vmatprep.subr.bf16.mxu0 %v810_v8 }
 0x12d   : > { %532 = vmatpush3.bf16.msra.mxu0 %v629_v14 }
 0x12e   : > { %533 = vmatprep.subr.bf16.mxu0 %v810_v8 }
 0x131   : > { %534 = vmatpush3.bf16.msra.mxu0 %v630_v15 }
 0x134   : > { %536 = vmatmul.mubr.bf16.vlgmr.msra.gmra.mrb[0].mxu0 %v278_v17 }
 0x207   : > { %v367_v19 = vpop.f32.mrb[0].mxu0  ;;  %380 = sbr.rel (%p504_p0) target bundleno = 526 (0x20e), region = 52 }
 0x208   : > { %v368_v20 = vadd.f32 %v495_v18, %v367_v19  ;;  %v537_v21 = vpop.f32.mrb[1].mxu0 }
 0x209   : > { %v370_v22 = vpop.f32.mrb[2].mxu0 }
 0x20a   : > { %vm373_vm1 = vcmp.ge.f32.partialorder %v368_v20, 0.0  ;;  %v374_v23 = vmul.f32 0.2, %v368_v20  ;;  %v538_v24 = vpop.f32.mrb[3].mxu0 }
 0x20c   : > { %v375_v25 = vsel %vm373_vm1, %v368_v20, %v374_v23 }
 0x20d   : > { %376 = vst [vmem:[#allocation2] sm:$0xff] %v375_v25  ;;  %381 = vst [vmem:[#allocation9] sm:$0xff] (!%p504_p0), %v375_v25 }
 0x20e PF: > { %p565_p5 = scmp.eq.s32.totalorder %s921_s27, 7  ;;  %s812_s30 = smov [#allocation9]  }
 0x20f   : > { %s391_s6 = sshll.u32 %s812_s30, 4  ;;  %s392_s6 = int_to_ptr.vmem [resolvable:$true] %s391_s6 }
 0x210   : > { %s719_s8 = scalar_lea.vmem %s392_s6, 128  ;;  %p726_p11 = scmp.lt.s32.totalorder %s392_s6, %s392_s6 }
 0x211   : > { %p720_p1 = scmp.ne.s32.totalorder %s392_s6, %s719_s8  ;;  %p727_p12 = scmp.lt.s32.totalorder %s719_s8, %s719_s8 }
 0x213   : > { %p721_p4 = pnand %p720_p1, %p565_p5  ;;  %p728_p6 = por %p727_p12, %p726_p11 }
 0x215   : > { %p722_p7 = pneg %p721_p4 }
 0x217   : > { %p729_p8 = pnand %p728_p6, %p722_p7 }
 0x219   : > { %732 = shalt.err (!%p729_p8)
}
 0x21a   : > { %s733_s20 = scalar_lea.hbm %s1067_s3, 128 }
 0x21b   : > { %p734_p10 = scmp.ne.s32.totalorder %s1067_s3, %s733_s20  ;;  %p739_p3 = scmp.lt.u32.totalorder %s733_s20, %s1067_s3 }
 0x21d   : > { %p735_p13 = pnand %p734_p10, %p565_p5 }
 0x21f   : > { %p736_p2 = pneg %p735_p13 }
 0x221   : > { %p741_p9 = pnand %p739_p3, %p736_p2 }
 0x223   : > { %744 = shalt.err (!%p741_p9)
}
 0x224   : > { %548 = dma.vmem_to_hbm [thread:$0]  (%p565_p5), %s392_s6, 128, %s1067_s3, [#allocation5]  }
 0x225   : > { %778 = dma.done.wait (%p565_p5), [#allocation5], 128  }
 0x226   : > { %780 = vsyncadd (%p565_p5), [#allocation5], 4294967168 }
 0x227 PF: > { %s18_s17 = sadd.s32 1, %s803_s17   ;;  %s1085_s12 = smov %s787_s13 }
 0x228   : > { %p15_p0 = scmp.ge.s32.totalorder %s18_s17, 10   ;;  %s1086_s13 = smov %s791_s14 }
 0x229   : > { %s1087_s14 = smov %s877_s24  ;;  %s1088_s15 = smov %s799_s16 }
 0x22a   : > { %s1089_s16 = smov %s1091_s18  ;;  %17 = sbr.rel (!%p15_p0) target bundleno = 6 (0x6), region = 95 }
 0x231   :  { %404 = vsyncpa [#allocation4], 1 }
 0x232   :  { %406 = vsyncpa [#allocation4 + $0x1], 1 }
 0x233   :  { %407 = vsyncpa [#allocation7], 1 }
 0x234   :  { %409 = vsyncpa [#allocation7 + $0x1], 1 }
 0x235   :  { %410 = vsyncpa [#allocation5], 1 }
 0x236   :  { %412 = vsyncpa [#allocation5 + $0x1], 1 }

</bundles_post_ra>
